<compile_context>
chip_gen: v6e
topology: v6e:2x2x1
jax: 0.10.0
libtpu: 0.0.40
codegen_flags: <defaults>
</compile_context>

<pallas_src>
import jax
import jax.numpy as jnp
from jax.experimental import pallas as pl
from jax.experimental.pallas import tpu as pltpu

# Model hyperparameters (FootballPredictorSimple defaults)
NUM_TEAMS = 10
FEATURE_DIM = 2
TEAM_EMBED_DIM = 12
CONV_HIDDEN = 24
FC_HIDDEN = 48
NUM_CLASSES = 2

# ---- packed-weight slab layout (rows x 4H lanes), built once in prepare_params ----
_W_SLAB = 4 * CONV_HIDDEN                      # lane width = 96
_R_WX = 0                                      # (C, 4H)   input->gates
_R_WH = _R_WX + FEATURE_DIM                    # (H, 4H)   hidden->gates
_R_BG = _R_WH + CONV_HIDDEN                    # (1, 4H)   gate bias
_R_W1L = _R_BG + 1                             # (H, FC)   w1 rows for h_l
_R_W1V = _R_W1L + CONV_HIDDEN                  # (H, FC)   w1 rows for h_v
_R_W1E = _R_W1V + CONV_HIDDEN                  # (2E, FC)  w1 rows for [el||ev]
_R_B1 = _R_W1E + 2 * TEAM_EMBED_DIM            # (1, FC)
_R_W2 = _R_B1 + 1                              # (FC, NC)
_R_B2 = _R_W2 + FC_HIDDEN                      # (1, NC)
_R_EMB = _R_B2 + 1                             # (NUM_TEAMS, E) embedding table
_R_END = _R_EMB + NUM_TEAMS


def _football_kernel(seq_ref, idx_ref, slab_ref, out_ref):
    H, E, FC, NC = CONV_HIDDEN, TEAM_EMBED_DIM, FC_HIDDEN, NUM_CLASSES
    B2 = idx_ref.shape[0]          # 2*B : league batch stacked with visitor batch
    B = B2 // 2
    T = seq_ref.shape[0] // B2

    wx = slab_ref[_R_WX:_R_WH, :]          # (C, 4H)
    wh = slab_ref[_R_WH:_R_BG, :]          # (H, 4H)
    bg = slab_ref[_R_BG:_R_W1L, :]         # (1, 4H)

    # ---- hoisted input projection: all time steps, both sequences, one matmul ----
    xproj = jnp.dot(seq_ref[...], wx,
                    preferred_element_type=jnp.float32) + bg        # (T*2B, 4H)

    # ---- single LSTM recurrence over the stacked (league, visitor) batch ----
    h = jnp.zeros((B2, H), jnp.float32)
    c = jnp.zeros((B2, H), jnp.float32)
    for t in range(T):   # T is small & static -> unrolled, good for LLO scheduling
        gates = xproj[t * B2:(t + 1) * B2, :] + jnp.dot(
            h, wh, preferred_element_type=jnp.float32)               # (2B, 4H)
        sig = jax.nn.sigmoid(gates[:, :3 * H])    # i,f,o in ONE EUP pass
        i_g = sig[:, 0:H]
        f_g = sig[:, H:2 * H]
        o_g = sig[:, 2 * H:3 * H]
        g_g = jnp.tanh(gates[:, 3 * H:])
        c = f_g * c + i_g * g_g
        h = o_g * jnp.tanh(c)

    h_l = h[:B, :]                                                    # (B, H)
    h_v = h[B:, :]                                                    # (B, H)

    # ---- in-kernel embedding gather: indices in SMEM, table rows in the slab ----
    def take_row(i):
        row = slab_ref[pl.ds(_R_EMB + idx_ref[i], 1), :]              # (1, 4H)
        return row[:, :E]                                             # (1, E)

    e_l = jnp.concatenate([take_row(b) for b in range(B)], axis=0)        # (B, E)
    e_v = jnp.concatenate([take_row(B + b) for b in range(B)], axis=0)    # (B, E)
    e_cat = jnp.concatenate([e_l, e_v], axis=1)                           # (B, 2E)

    # ---- MLP: concat([h_l, h_v, el, ev]) @ w1 expressed as 3 partial dots ----
    w1l = slab_ref[_R_W1L:_R_W1V, :][:, :FC]
    w1v = slab_ref[_R_W1V:_R_W1E, :][:, :FC]
    w1e = slab_ref[_R_W1E:_R_B1, :][:, :FC]
    b1 = slab_ref[_R_B1:_R_W2, :][:, :FC]
    z = (jnp.dot(h_l, w1l, preferred_element_type=jnp.float32)
         + jnp.dot(h_v, w1v, preferred_element_type=jnp.float32)
         + jnp.dot(e_cat, w1e, preferred_element_type=jnp.float32)
         + b1)
    z = jnp.maximum(z, 0.0)
    # TODO(synk): nn.Dropout is treated as inference-mode identity.
    w2 = slab_ref[_R_W2:_R_B2, :][:, :NC]
    b2 = slab_ref[_R_B2:_R_EMB, :][:, :NC]
    out_ref[...] = jnp.dot(z, w2, preferred_element_type=jnp.float32) + b2


def prepare_params(params):
    """One-time weight packing: centre-tap extraction, transposes, w1 split,
    bias reshapes and the embedding table -> a single (rows, 4H) f32 slab."""
    H, C, E = CONV_HIDDEN, FEATURE_DIM, TEAM_EMBED_DIM
    FC, NC, W = FC_HIDDEN, NUM_CLASSES, _W_SLAB

    conv_w = params["conv_w"]                                  # (4H, C+H, kh, kw)
    kh, kw = conv_w.shape[2], conv_w.shape[3]
    # Centre-tap reduction is only valid for odd kernels with pad=k//2 on a
    # 1x1 spatial input (which is what FootballPredictorSimple produces).
    assert kh % 2 == 1 and kw % 2 == 1, "conv kernel must be odd-sized"
    assert conv_w.shape[:2] == (4 * H, C + H)
    w_center = conv_w[:, :, kh // 2, kw // 2]                  # (4H, C+H)
    wx = w_center[:, :C].T                                     # (C, 4H)
    wh = w_center[:, C:].T                                     # (H, 4H)
    bg = params["conv_b"].reshape(1, W)

    w1 = params["w1"]                                          # (2H+2E, FC)
    w1l, w1v, w1e = w1[:H], w1[H:2 * H], w1[2 * H:]
    b1 = params["b1"].reshape(1, FC)
    w2 = params["w2"]                                          # (FC, NC)
    b2 = params["b2"].reshape(1, NC)
    embed = params["embed"]                                    # (NUM_TEAMS, E)

    def pad(a):
        a = a.astype(jnp.float32)
        return jnp.pad(a, ((0, 0), (0, W - a.shape[1])))

    slab = jnp.concatenate(
        [pad(b) for b in (wx, wh, bg, w1l, w1v, w1e, b1, w2, b2, embed)], axis=0)
    assert slab.shape == (_R_END, W)
    return slab


@jax.jit
def football_predictor(slab, seq_l, seq_v, idx_l, idx_v):
    B, T, C = seq_l.shape
    # Stack league+visitor along batch so ONE LSTM recurrence serves both, and
    # flatten time-major so the kernel can hoist the input projection.
    seq = jnp.concatenate([seq_l, seq_v], axis=0).astype(jnp.float32)  # (2B, T, C)
    seq_tm = jnp.transpose(seq, (1, 0, 2)).reshape(T * 2 * B, C)       # (T*2B, C)
    idx = jnp.concatenate([idx_l, idx_v], axis=0).astype(jnp.int32)    # (2B,)

    vmem = pl.BlockSpec(memory_space=pltpu.MemorySpace.VMEM)
    smem = pl.BlockSpec(memory_space=pltpu.MemorySpace.SMEM)
    return pl.pallas_call(
        _football_kernel,
        out_shape=jax.ShapeDtypeStruct((B, NUM_CLASSES), jnp.float32),
        in_specs=[vmem, smem, vmem],
        out_specs=vmem,
    )(seq_tm, idx, slab)


def init_params(key):
    ks = jax.random.split(key, 7)
    H, C, E = CONV_HIDDEN, FEATURE_DIM, TEAM_EMBED_DIM
    in_feat = 2 * H + 2 * E
    return {
        "embed": jax.random.normal(ks[0], (NUM_TEAMS, E), jnp.float32),
        "conv_w": 0.1 * jax.random.normal(ks[1], (4 * H, C + H, 3, 3), jnp.float32),
        "conv_b": 0.1 * jax.random.normal(ks[2], (4 * H,), jnp.float32),
        "w1": 0.1 * jax.random.normal(ks[3], (in_feat, FC_HIDDEN), jnp.float32),
        "b1": 0.1 * jax.random.normal(ks[4], (FC_HIDDEN,), jnp.float32),
        "w2": 0.1 * jax.random.normal(ks[5], (FC_HIDDEN, NUM_CLASSES), jnp.float32),
        "b2": 0.1 * jax.random.normal(ks[6], (NUM_CLASSES,), jnp.float32),
    }


def _reference(params, seq_l, seq_v, idx_l, idx_v):
    """Pure-JAX reference reproducing the PyTorch forward semantics."""
    H, C = CONV_HIDDEN, FEATURE_DIM
    w_center = params["conv_w"][:, :, 1, 1]
    wx, wh = w_center[:, :C].T, w_center[:, C:].T
    bg = params["conv_b"]

    def lstm(seq):
        B, T, _ = seq.shape
        h = jnp.zeros((B, H)); c = jnp.zeros((B, H))
        for t in range(T):
            g = seq[:, t] @ wx + h @ wh + bg
            i, f, o, gg = (jax.nn.sigmoid(g[:, :H]), jax.nn.sigmoid(g[:, H:2*H]),
                           jax.nn.sigmoid(g[:, 2*H:3*H]), jnp.tanh(g[:, 3*H:]))
            c = f * c + i * gg
            h = o * jnp.tanh(c)
        return h

    hl, hv = lstm(seq_l), lstm(seq_v)
    el = params["embed"][idx_l]
    ev = params["embed"][idx_v]
    x = jnp.concatenate([hl, hv, el, ev], axis=1)
    z = jnp.maximum(x @ params["w1"] + params["b1"], 0.0)
    return z @ params["w2"] + params["b2"]


if __name__ == "__main__":
    key = jax.random.PRNGKey(0)
    pk, k1, k2, k3, k4 = jax.random.split(key, 5)
    params = init_params(pk)
    slab = prepare_params(params)   # one-time weight packing (not per call)

    B, T = 2, 8
    seq_l = jax.random.normal(k1, (B, T, FEATURE_DIM), jnp.float32)
    seq_v = jax.random.normal(k2, (B, T, FEATURE_DIM), jnp.float32)
    idx_l = jax.random.randint(k3, (B,), 0, NUM_TEAMS)
    idx_v = jax.random.randint(k4, (B,), 0, NUM_TEAMS)

    out = football_predictor(slab, seq_l, seq_v, idx_l, idx_v)
    jax.block_until_ready(out)

    ref = _reference(params, seq_l, seq_v, idx_l, idx_v)
    assert out.shape == (B, NUM_CLASSES)
    assert jnp.allclose(out, ref, atol=1e-4, rtol=1e-4)
    print("KERNEL_OK")
</pallas_src>

<mosaic_0001>
module attributes {stable_mosaic.version = 11 : i64} {
  func.func @_football_kernel(%arg0: memref<32x2xf32, #tpu.memory_space<vmem>>, %arg1: memref<4xi32, #tpu.memory_space<smem>>, %arg2: memref<159x96xf32, #tpu.memory_space<vmem>>, %arg3: memref<2x2xf32, #tpu.memory_space<vmem>>) attributes {dimension_semantics = [], scalar_prefetch = 0 : i64, scratch_operands = 0 : i64, tpu.core_type = #tpu.core_type<tc>} {
    %c0 = arith.constant 0 : index
    %c0_0 = arith.constant 0 : index
    %0 = vector.load %arg2[%c0, %c0_0] : memref<159x96xf32, #tpu.memory_space<vmem>>, vector<2x96xf32>
    %c2 = arith.constant 2 : index
    %c0_1 = arith.constant 0 : index
    %1 = vector.load %arg2[%c2, %c0_1] : memref<159x96xf32, #tpu.memory_space<vmem>>, vector<24x96xf32>
    %c26 = arith.constant 26 : index
    %c0_2 = arith.constant 0 : index
    %2 = vector.load %arg2[%c26, %c0_2] : memref<159x96xf32, #tpu.memory_space<vmem>>, vector<1x96xf32>
    %c0_3 = arith.constant 0 : index
    %c0_4 = arith.constant 0 : index
    %3 = vector.load %arg0[%c0_3, %c0_4] : memref<32x2xf32, #tpu.memory_space<vmem>>, vector<32x2xf32>
    %cst = arith.constant dense<0.000000e+00> : vector<32x96xf32>
    %4 = tpu.matmul %3, %0, %cst {dimension_numbers = #tpu.dot_dimension_numbers<[1], [0], [0], [1], [0, 0, 1, 1], [], []>} : vector<32x2xf32>, vector<2x96xf32>, vector<32x96xf32> -> vector<32x96xf32>
    %5 = vector.broadcast %2 : vector<1x96xf32> to vector<32x96xf32>
    %6 = arith.addf %4, %5 : vector<32x96xf32>
    %cst_5 = arith.constant 0.000000e+00 : f32
    %7 = vector.broadcast %cst_5 : f32 to vector<4x24xf32>
    %cst_6 = arith.constant 0.000000e+00 : f32
    %8 = vector.broadcast %cst_6 : f32 to vector<4x24xf32>
    %9 = vector.extract_strided_slice %6 {offsets = [0, 0], sizes = [4, 96], strides = [1, 1]} : vector<32x96xf32> to vector<4x96xf32>
    %cst_7 = arith.constant dense<0.000000e+00> : vector<4x96xf32>
    %10 = tpu.matmul %7, %1, %cst_7 {dimension_numbers = #tpu.dot_dimension_numbers<[1], [0], [0], [1], [0, 0, 1, 1], [], []>} : vector<4x24xf32>, vector<24x96xf32>, vector<4x96xf32> -> vector<4x96xf32>
    %11 = arith.addf %9, %10 : vector<4x96xf32>
    %12 = vector.extract_strided_slice %11 {offsets = [0, 0], sizes = [4, 72], strides = [1, 1]} : vector<4x96xf32> to vector<4x72xf32>
    %13 = arith.negf %12 : vector<4x72xf32>
    %14 = math.exp %13 : vector<4x72xf32>
    %cst_8 = arith.constant 1.000000e+00 : f32
    %15 = vector.broadcast %cst_8 : f32 to vector<4x72xf32>
    %16 = arith.addf %15, %14 : vector<4x72xf32>
    %17 = arith.divf %15, %16 : vector<4x72xf32>
    %18 = vector.extract_strided_slice %17 {offsets = [0, 0], sizes = [4, 24], strides = [1, 1]} : vector<4x72xf32> to vector<4x24xf32>
    %19 = vector.extract_strided_slice %17 {offsets = [0, 24], sizes = [4, 24], strides = [1, 1]} : vector<4x72xf32> to vector<4x24xf32>
    %20 = vector.extract_strided_slice %17 {offsets = [0, 48], sizes = [4, 24], strides = [1, 1]} : vector<4x72xf32> to vector<4x24xf32>
    %21 = vector.extract_strided_slice %11 {offsets = [0, 72], sizes = [4, 24], strides = [1, 1]} : vector<4x96xf32> to vector<4x24xf32>
    %22 = math.tanh %21 : vector<4x24xf32>
    %23 = arith.mulf %19, %8 : vector<4x24xf32>
    %24 = arith.mulf %18, %22 : vector<4x24xf32>
    %25 = arith.addf %23, %24 : vector<4x24xf32>
    %26 = math.tanh %25 : vector<4x24xf32>
    %27 = arith.mulf %20, %26 : vector<4x24xf32>
    %28 = vector.extract_strided_slice %6 {offsets = [4, 0], sizes = [4, 96], strides = [1, 1]} : vector<32x96xf32> to vector<4x96xf32>
    %cst_9 = arith.constant dense<0.000000e+00> : vector<4x96xf32>
    %29 = tpu.matmul %27, %1, %cst_9 {dimension_numbers = #tpu.dot_dimension_numbers<[1], [0], [0], [1], [0, 0, 1, 1], [], []>} : vector<4x24xf32>, vector<24x96xf32>, vector<4x96xf32> -> vector<4x96xf32>
    %30 = arith.addf %28, %29 : vector<4x96xf32>
    %31 = vector.extract_strided_slice %30 {offsets = [0, 0], sizes = [4, 72], strides = [1, 1]} : vector<4x96xf32> to vector<4x72xf32>
    %32 = arith.negf %31 : vector<4x72xf32>
    %33 = math.exp %32 : vector<4x72xf32>
    %cst_10 = arith.constant 1.000000e+00 : f32
    %34 = vector.broadcast %cst_10 : f32 to vector<4x72xf32>
    %35 = arith.addf %34, %33 : vector<4x72xf32>
    %36 = arith.divf %34, %35 : vector<4x72xf32>
    %37 = vector.extract_strided_slice %36 {offsets = [0, 0], sizes = [4, 24], strides = [1, 1]} : vector<4x72xf32> to vector<4x24xf32>
    %38 = vector.extract_strided_slice %36 {offsets = [0, 24], sizes = [4, 24], strides = [1, 1]} : vector<4x72xf32> to vector<4x24xf32>
    %39 = vector.extract_strided_slice %36 {offsets = [0, 48], sizes = [4, 24], strides = [1, 1]} : vector<4x72xf32> to vector<4x24xf32>
    %40 = vector.extract_strided_slice %30 {offsets = [0, 72], sizes = [4, 24], strides = [1, 1]} : vector<4x96xf32> to vector<4x24xf32>
    %41 = math.tanh %40 : vector<4x24xf32>
    %42 = arith.mulf %38, %25 : vector<4x24xf32>
    %43 = arith.mulf %37, %41 : vector<4x24xf32>
    %44 = arith.addf %42, %43 : vector<4x24xf32>
    %45 = math.tanh %44 : vector<4x24xf32>
    %46 = arith.mulf %39, %45 : vector<4x24xf32>
    %47 = vector.extract_strided_slice %6 {offsets = [8, 0], sizes = [4, 96], strides = [1, 1]} : vector<32x96xf32> to vector<4x96xf32>
    %cst_11 = arith.constant dense<0.000000e+00> : vector<4x96xf32>
    %48 = tpu.matmul %46, %1, %cst_11 {dimension_numbers = #tpu.dot_dimension_numbers<[1], [0], [0], [1], [0, 0, 1, 1], [], []>} : vector<4x24xf32>, vector<24x96xf32>, vector<4x96xf32> -> vector<4x96xf32>
    %49 = arith.addf %47, %48 : vector<4x96xf32>
    %50 = vector.extract_strided_slice %49 {offsets = [0, 0], sizes = [4, 72], strides = [1, 1]} : vector<4x96xf32> to vector<4x72xf32>
    %51 = arith.negf %50 : vector<4x72xf32>
    %52 = math.exp %51 : vector<4x72xf32>
    %cst_12 = arith.constant 1.000000e+00 : f32
    %53 = vector.broadcast %cst_12 : f32 to vector<4x72xf32>
    %54 = arith.addf %53, %52 : vector<4x72xf32>
    %55 = arith.divf %53, %54 : vector<4x72xf32>
    %56 = vector.extract_strided_slice %55 {offsets = [0, 0], sizes = [4, 24], strides = [1, 1]} : vector<4x72xf32> to vector<4x24xf32>
    %57 = vector.extract_strided_slice %55 {offsets = [0, 24], sizes = [4, 24], strides = [1, 1]} : vector<4x72xf32> to vector<4x24xf32>
    %58 = vector.extract_strided_slice %55 {offsets = [0, 48], sizes = [4, 24], strides = [1, 1]} : vector<4x72xf32> to vector<4x24xf32>
    %59 = vector.extract_strided_slice %49 {offsets = [0, 72], sizes = [4, 24], strides = [1, 1]} : vector<4x96xf32> to vector<4x24xf32>
    %60 = math.tanh %59 : vector<4x24xf32>
    %61 = arith.mulf %57, %44 : vector<4x24xf32>
    %62 = arith.mulf %56, %60 : vector<4x24xf32>
    %63 = arith.addf %61, %62 : vector<4x24xf32>
    %64 = math.tanh %63 : vector<4x24xf32>
    %65 = arith.mulf %58, %64 : vector<4x24xf32>
    %66 = vector.extract_strided_slice %6 {offsets = [12, 0], sizes = [4, 96], strides = [1, 1]} : vector<32x96xf32> to vector<4x96xf32>
    %cst_13 = arith.constant dense<0.000000e+00> : vector<4x96xf32>
    %67 = tpu.matmul %65, %1, %cst_13 {dimension_numbers = #tpu.dot_dimension_numbers<[1], [0], [0], [1], [0, 0, 1, 1], [], []>} : vector<4x24xf32>, vector<24x96xf32>, vector<4x96xf32> -> vector<4x96xf32>
    %68 = arith.addf %66, %67 : vector<4x96xf32>
    %69 = vector.extract_strided_slice %68 {offsets = [0, 0], sizes = [4, 72], strides = [1, 1]} : vector<4x96xf32> to vector<4x72xf32>
    %70 = arith.negf %69 : vector<4x72xf32>
    %71 = math.exp %70 : vector<4x72xf32>
    %cst_14 = arith.constant 1.000000e+00 : f32
    %72 = vector.broadcast %cst_14 : f32 to vector<4x72xf32>
    %73 = arith.addf %72, %71 : vector<4x72xf32>
    %74 = arith.divf %72, %73 : vector<4x72xf32>
    %75 = vector.extract_strided_slice %74 {offsets = [0, 0], sizes = [4, 24], strides = [1, 1]} : vector<4x72xf32> to vector<4x24xf32>
    %76 = vector.extract_strided_slice %74 {offsets = [0, 24], sizes = [4, 24], strides = [1, 1]} : vector<4x72xf32> to vector<4x24xf32>
    %77 = vector.extract_strided_slice %74 {offsets = [0, 48], sizes = [4, 24], strides = [1, 1]} : vector<4x72xf32> to vector<4x24xf32>
    %78 = vector.extract_strided_slice %68 {offsets = [0, 72], sizes = [4, 24], strides = [1, 1]} : vector<4x96xf32> to vector<4x24xf32>
    %79 = math.tanh %78 : vector<4x24xf32>
    %80 = arith.mulf %76, %63 : vector<4x24xf32>
    %81 = arith.mulf %75, %79 : vector<4x24xf32>
    %82 = arith.addf %80, %81 : vector<4x24xf32>
    %83 = math.tanh %82 : vector<4x24xf32>
    %84 = arith.mulf %77, %83 : vector<4x24xf32>
    %85 = vector.extract_strided_slice %6 {offsets = [16, 0], sizes = [4, 96], strides = [1, 1]} : vector<32x96xf32> to vector<4x96xf32>
    %cst_15 = arith.constant dense<0.000000e+00> : vector<4x96xf32>
    %86 = tpu.matmul %84, %1, %cst_15 {dimension_numbers = #tpu.dot_dimension_numbers<[1], [0], [0], [1], [0, 0, 1, 1], [], []>} : vector<4x24xf32>, vector<24x96xf32>, vector<4x96xf32> -> vector<4x96xf32>
    %87 = arith.addf %85, %86 : vector<4x96xf32>
    %88 = vector.extract_strided_slice %87 {offsets = [0, 0], sizes = [4, 72], strides = [1, 1]} : vector<4x96xf32> to vector<4x72xf32>
    %89 = arith.negf %88 : vector<4x72xf32>
    %90 = math.exp %89 : vector<4x72xf32>
    %cst_16 = arith.constant 1.000000e+00 : f32
    %91 = vector.broadcast %cst_16 : f32 to vector<4x72xf32>
    %92 = arith.addf %91, %90 : vector<4x72xf32>
    %93 = arith.divf %91, %92 : vector<4x72xf32>
    %94 = vector.extract_strided_slice %93 {offsets = [0, 0], sizes = [4, 24], strides = [1, 1]} : vector<4x72xf32> to vector<4x24xf32>
    %95 = vector.extract_strided_slice %93 {offsets = [0, 24], sizes = [4, 24], strides = [1, 1]} : vector<4x72xf32> to vector<4x24xf32>
    %96 = vector.extract_strided_slice %93 {offsets = [0, 48], sizes = [4, 24], strides = [1, 1]} : vector<4x72xf32> to vector<4x24xf32>
    %97 = vector.extract_strided_slice %87 {offsets = [0, 72], sizes = [4, 24], strides = [1, 1]} : vector<4x96xf32> to vector<4x24xf32>
    %98 = math.tanh %97 : vector<4x24xf32>
    %99 = arith.mulf %95, %82 : vector<4x24xf32>
    %100 = arith.mulf %94, %98 : vector<4x24xf32>
    %101 = arith.addf %99, %100 : vector<4x24xf32>
    %102 = math.tanh %101 : vector<4x24xf32>
    %103 = arith.mulf %96, %102 : vector<4x24xf32>
    %104 = vector.extract_strided_slice %6 {offsets = [20, 0], sizes = [4, 96], strides = [1, 1]} : vector<32x96xf32> to vector<4x96xf32>
    %cst_17 = arith.constant dense<0.000000e+00> : vector<4x96xf32>
    %105 = tpu.matmul %103, %1, %cst_17 {dimension_numbers = #tpu.dot_dimension_numbers<[1], [0], [0], [1], [0, 0, 1, 1], [], []>} : vector<4x24xf32>, vector<24x96xf32>, vector<4x96xf32> -> vector<4x96xf32>
    %106 = arith.addf %104, %105 : vector<4x96xf32>
    %107 = vector.extract_strided_slice %106 {offsets = [0, 0], sizes = [4, 72], strides = [1, 1]} : vector<4x96xf32> to vector<4x72xf32>
    %108 = arith.negf %107 : vector<4x72xf32>
    %109 = math.exp %108 : vector<4x72xf32>
    %cst_18 = arith.constant 1.000000e+00 : f32
    %110 = vector.broadcast %cst_18 : f32 to vector<4x72xf32>
    %111 = arith.addf %110, %109 : vector<4x72xf32>
    %112 = arith.divf %110, %111 : vector<4x72xf32>
    %113 = vector.extract_strided_slice %112 {offsets = [0, 0], sizes = [4, 24], strides = [1, 1]} : vector<4x72xf32> to vector<4x24xf32>
    %114 = vector.extract_strided_slice %112 {offsets = [0, 24], sizes = [4, 24], strides = [1, 1]} : vector<4x72xf32> to vector<4x24xf32>
    %115 = vector.extract_strided_slice %112 {offsets = [0, 48], sizes = [4, 24], strides = [1, 1]} : vector<4x72xf32> to vector<4x24xf32>
    %116 = vector.extract_strided_slice %106 {offsets = [0, 72], sizes = [4, 24], strides = [1, 1]} : vector<4x96xf32> to vector<4x24xf32>
    %117 = math.tanh %116 : vector<4x24xf32>
    %118 = arith.mulf %114, %101 : vector<4x24xf32>
    %119 = arith.mulf %113, %117 : vector<4x24xf32>
    %120 = arith.addf %118, %119 : vector<4x24xf32>
    %121 = math.tanh %120 : vector<4x24xf32>
    %122 = arith.mulf %115, %121 : vector<4x24xf32>
    %123 = vector.extract_strided_slice %6 {offsets = [24, 0], sizes = [4, 96], strides = [1, 1]} : vector<32x96xf32> to vector<4x96xf32>
    %cst_19 = arith.constant dense<0.000000e+00> : vector<4x96xf32>
    %124 = tpu.matmul %122, %1, %cst_19 {dimension_numbers = #tpu.dot_dimension_numbers<[1], [0], [0], [1], [0, 0, 1, 1], [], []>} : vector<4x24xf32>, vector<24x96xf32>, vector<4x96xf32> -> vector<4x96xf32>
    %125 = arith.addf %123, %124 : vector<4x96xf32>
    %126 = vector.extract_strided_slice %125 {offsets = [0, 0], sizes = [4, 72], strides = [1, 1]} : vector<4x96xf32> to vector<4x72xf32>
    %127 = arith.negf %126 : vector<4x72xf32>
    %128 = math.exp %127 : vector<4x72xf32>
    %cst_20 = arith.constant 1.000000e+00 : f32
    %129 = vector.broadcast %cst_20 : f32 to vector<4x72xf32>
    %130 = arith.addf %129, %128 : vector<4x72xf32>
    %131 = arith.divf %129, %130 : vector<4x72xf32>
    %132 = vector.extract_strided_slice %131 {offsets = [0, 0], sizes = [4, 24], strides = [1, 1]} : vector<4x72xf32> to vector<4x24xf32>
    %133 = vector.extract_strided_slice %131 {offsets = [0, 24], sizes = [4, 24], strides = [1, 1]} : vector<4x72xf32> to vector<4x24xf32>
    %134 = vector.extract_strided_slice %131 {offsets = [0, 48], sizes = [4, 24], strides = [1, 1]} : vector<4x72xf32> to vector<4x24xf32>
    %135 = vector.extract_strided_slice %125 {offsets = [0, 72], sizes = [4, 24], strides = [1, 1]} : vector<4x96xf32> to vector<4x24xf32>
    %136 = math.tanh %135 : vector<4x24xf32>
    %137 = arith.mulf %133, %120 : vector<4x24xf32>
    %138 = arith.mulf %132, %136 : vector<4x24xf32>
    %139 = arith.addf %137, %138 : vector<4x24xf32>
    %140 = math.tanh %139 : vector<4x24xf32>
    %141 = arith.mulf %134, %140 : vector<4x24xf32>
    %142 = vector.extract_strided_slice %6 {offsets = [28, 0], sizes = [4, 96], strides = [1, 1]} : vector<32x96xf32> to vector<4x96xf32>
    %cst_21 = arith.constant dense<0.000000e+00> : vector<4x96xf32>
    %143 = tpu.matmul %141, %1, %cst_21 {dimension_numbers = #tpu.dot_dimension_numbers<[1], [0], [0], [1], [0, 0, 1, 1], [], []>} : vector<4x24xf32>, vector<24x96xf32>, vector<4x96xf32> -> vector<4x96xf32>
    %144 = arith.addf %142, %143 : vector<4x96xf32>
    %145 = vector.extract_strided_slice %144 {offsets = [0, 0], sizes = [4, 72], strides = [1, 1]} : vector<4x96xf32> to vector<4x72xf32>
    %146 = arith.negf %145 : vector<4x72xf32>
    %147 = math.exp %146 : vector<4x72xf32>
    %cst_22 = arith.constant 1.000000e+00 : f32
    %148 = vector.broadcast %cst_22 : f32 to vector<4x72xf32>
    %149 = arith.addf %148, %147 : vector<4x72xf32>
    %150 = arith.divf %148, %149 : vector<4x72xf32>
    %151 = vector.extract_strided_slice %150 {offsets = [0, 0], sizes = [4, 24], strides = [1, 1]} : vector<4x72xf32> to vector<4x24xf32>
    %152 = vector.extract_strided_slice %150 {offsets = [0, 24], sizes = [4, 24], strides = [1, 1]} : vector<4x72xf32> to vector<4x24xf32>
    %153 = vector.extract_strided_slice %150 {offsets = [0, 48], sizes = [4, 24], strides = [1, 1]} : vector<4x72xf32> to vector<4x24xf32>
    %154 = vector.extract_strided_slice %144 {offsets = [0, 72], sizes = [4, 24], strides = [1, 1]} : vector<4x96xf32> to vector<4x24xf32>
    %155 = math.tanh %154 : vector<4x24xf32>
    %156 = arith.mulf %152, %139 : vector<4x24xf32>
    %157 = arith.mulf %151, %155 : vector<4x24xf32>
    %158 = arith.addf %156, %157 : vector<4x24xf32>
    %159 = math.tanh %158 : vector<4x24xf32>
    %160 = arith.mulf %153, %159 : vector<4x24xf32>
    %161 = vector.extract_strided_slice %160 {offsets = [0, 0], sizes = [2, 24], strides = [1, 1]} : vector<4x24xf32> to vector<2x24xf32>
    %162 = vector.extract_strided_slice %160 {offsets = [2, 0], sizes = [2, 24], strides = [1, 1]} : vector<4x24xf32> to vector<2x24xf32>
    %c0_23 = arith.constant 0 : index
    %163 = memref.load %arg1[%c0_23] : memref<4xi32, #tpu.memory_space<smem>>
    %c149_i32 = arith.constant 149 : i32
    %164 = arith.addi %c149_i32, %163 : i32
    %165 = arith.index_cast %164 : i32 to index
    %c0_24 = arith.constant 0 : index
    %166 = vector.load %arg2[%165, %c0_24] : memref<159x96xf32, #tpu.memory_space<vmem>>, vector<1x96xf32>
    %167 = vector.extract_strided_slice %166 {offsets = [0, 0], sizes = [1, 12], strides = [1, 1]} : vector<1x96xf32> to vector<1x12xf32>
    %c1 = arith.constant 1 : index
    %168 = memref.load %arg1[%c1] : memref<4xi32, #tpu.memory_space<smem>>
    %c149_i32_25 = arith.constant 149 : i32
    %169 = arith.addi %c149_i32_25, %168 : i32
    %170 = arith.index_cast %169 : i32 to index
    %c0_26 = arith.constant 0 : index
    %171 = vector.load %arg2[%170, %c0_26] : memref<159x96xf32, #tpu.memory_space<vmem>>, vector<1x96xf32>
    %172 = vector.extract_strided_slice %171 {offsets = [0, 0], sizes = [1, 12], strides = [1, 1]} : vector<1x96xf32> to vector<1x12xf32>
    %173 = tpu.concatenate %167, %172 in 0 : vector<1x12xf32>, vector<1x12xf32> -> vector<2x12xf32>
    %c2_27 = arith.constant 2 : index
    %174 = memref.load %arg1[%c2_27] : memref<4xi32, #tpu.memory_space<smem>>
    %c149_i32_28 = arith.constant 149 : i32
    %175 = arith.addi %c149_i32_28, %174 : i32
    %176 = arith.index_cast %175 : i32 to index
    %c0_29 = arith.constant 0 : index
    %177 = vector.load %arg2[%176, %c0_29] : memref<159x96xf32, #tpu.memory_space<vmem>>, vector<1x96xf32>
    %178 = vector.extract_strided_slice %177 {offsets = [0, 0], sizes = [1, 12], strides = [1, 1]} : vector<1x96xf32> to vector<1x12xf32>
    %c3 = arith.constant 3 : index
    %179 = memref.load %arg1[%c3] : memref<4xi32, #tpu.memory_space<smem>>
    %c149_i32_30 = arith.constant 149 : i32
    %180 = arith.addi %c149_i32_30, %179 : i32
    %181 = arith.index_cast %180 : i32 to index
    %c0_31 = arith.constant 0 : index
    %182 = vector.load %arg2[%181, %c0_31] : memref<159x96xf32, #tpu.memory_space<vmem>>, vector<1x96xf32>
    %183 = vector.extract_strided_slice %182 {offsets = [0, 0], sizes = [1, 12], strides = [1, 1]} : vector<1x96xf32> to vector<1x12xf32>
    %184 = tpu.concatenate %178, %183 in 0 : vector<1x12xf32>, vector<1x12xf32> -> vector<2x12xf32>
    %185 = tpu.concatenate %173, %184 in 1 : vector<2x12xf32>, vector<2x12xf32> -> vector<2x24xf32>
    %c27 = arith.constant 27 : index
    %c0_32 = arith.constant 0 : index
    %186 = vector.load %arg2[%c27, %c0_32] : memref<159x96xf32, #tpu.memory_space<vmem>>, vector<24x96xf32>
    %187 = vector.extract_strided_slice %186 {offsets = [0, 0], sizes = [24, 48], strides = [1, 1]} : vector<24x96xf32> to vector<24x48xf32>
    %c51 = arith.constant 51 : index
    %c0_33 = arith.constant 0 : index
    %188 = vector.load %arg2[%c51, %c0_33] : memref<159x96xf32, #tpu.memory_space<vmem>>, vector<24x96xf32>
    %189 = vector.extract_strided_slice %188 {offsets = [0, 0], sizes = [24, 48], strides = [1, 1]} : vector<24x96xf32> to vector<24x48xf32>
    %c75 = arith.constant 75 : index
    %c0_34 = arith.constant 0 : index
    %190 = vector.load %arg2[%c75, %c0_34] : memref<159x96xf32, #tpu.memory_space<vmem>>, vector<24x96xf32>
    %191 = vector.extract_strided_slice %190 {offsets = [0, 0], sizes = [24, 48], strides = [1, 1]} : vector<24x96xf32> to vector<24x48xf32>
    %c99 = arith.constant 99 : index
    %c0_35 = arith.constant 0 : index
    %192 = vector.load %arg2[%c99, %c0_35] : memref<159x96xf32, #tpu.memory_space<vmem>>, vector<1x96xf32>
    %193 = vector.extract_strided_slice %192 {offsets = [0, 0], sizes = [1, 48], strides = [1, 1]} : vector<1x96xf32> to vector<1x48xf32>
    %cst_36 = arith.constant dense<0.000000e+00> : vector<2x48xf32>
    %194 = tpu.matmul %161, %187, %cst_36 {dimension_numbers = #tpu.dot_dimension_numbers<[1], [0], [0], [1], [0, 0, 1, 1], [], []>} : vector<2x24xf32>, vector<24x48xf32>, vector<2x48xf32> -> vector<2x48xf32>
    %cst_37 = arith.constant dense<0.000000e+00> : vector<2x48xf32>
    %195 = tpu.matmul %162, %189, %cst_37 {dimension_numbers = #tpu.dot_dimension_numbers<[1], [0], [0], [1], [0, 0, 1, 1], [], []>} : vector<2x24xf32>, vector<24x48xf32>, vector<2x48xf32> -> vector<2x48xf32>
    %196 = arith.addf %194, %195 : vector<2x48xf32>
    %cst_38 = arith.constant dense<0.000000e+00> : vector<2x48xf32>
    %197 = tpu.matmul %185, %191, %cst_38 {dimension_numbers = #tpu.dot_dimension_numbers<[1], [0], [0], [1], [0, 0, 1, 1], [], []>} : vector<2x24xf32>, vector<24x48xf32>, vector<2x48xf32> -> vector<2x48xf32>
    %198 = arith.addf %196, %197 : vector<2x48xf32>
    %199 = vector.broadcast %193 : vector<1x48xf32> to vector<2x48xf32>
    %200 = arith.addf %198, %199 : vector<2x48xf32>
    %cst_39 = arith.constant 0.000000e+00 : f32
    %201 = vector.broadcast %cst_39 : f32 to vector<2x48xf32>
    %202 = arith.maximumf %200, %201 : vector<2x48xf32>
    %c100 = arith.constant 100 : index
    %c0_40 = arith.constant 0 : index
    %203 = vector.load %arg2[%c100, %c0_40] : memref<159x96xf32, #tpu.memory_space<vmem>>, vector<48x96xf32>
    %204 = vector.extract_strided_slice %203 {offsets = [0, 0], sizes = [48, 2], strides = [1, 1]} : vector<48x96xf32> to vector<48x2xf32>
    %c148 = arith.constant 148 : index
    %c0_41 = arith.constant 0 : index
    %205 = vector.load %arg2[%c148, %c0_41] : memref<159x96xf32, #tpu.memory_space<vmem>>, vector<1x96xf32>
    %206 = vector.extract_strided_slice %205 {offsets = [0, 0], sizes = [1, 2], strides = [1, 1]} : vector<1x96xf32> to vector<1x2xf32>
    %cst_42 = arith.constant dense<0.000000e+00> : vector<2x2xf32>
    %207 = tpu.matmul %202, %204, %cst_42 {dimension_numbers = #tpu.dot_dimension_numbers<[1], [0], [0], [1], [0, 0, 1, 1], [], []>} : vector<2x48xf32>, vector<48x2xf32>, vector<2x2xf32> -> vector<2x2xf32>
    %208 = vector.broadcast %206 : vector<1x2xf32> to vector<2x2xf32>
    %209 = arith.addf %207, %208 : vector<2x2xf32>
    %c0_43 = arith.constant 0 : index
    %c0_44 = arith.constant 0 : index
    %210 = vector.load %arg3[%c0_43, %c0_44] : memref<2x2xf32, #tpu.memory_space<vmem>>, vector<2x2xf32>
    tpu.vector_store %arg3[%c0_43, %c0_44], %209 {strides = array<i32>} : memref<2x2xf32, #tpu.memory_space<vmem>>, vector<2x2xf32>,
    return
  }
}

</mosaic_0001>

<bundles_post_ra>
// kernel: football_predictor.1
= control target key start
LH: loop header
LB: loop body
LE: loop exit
PB: predicated region body
PF: predicated region fallthrough
CT: control target
= control target key end

     0   :  { %8 = vsyncpa [#allocation5], 0  ;;  %s1927_s0 = inlined_call_operand.vmem [shape: f32[32,2], index: 0, kind: input, shape index: {}]   ;;  %s1928_s1 = inlined_call_operand.vmem [shape: s32[4], index: 1, kind: input, shape index: {}]   ;;  %s1929_s2 = inlined_call_operand.hbm [shape: f32[159,96], index: 2, kind: input, shape index: {}]   ;;  %s1930_s3 = inlined_call_operand.hbm [shape: f32[2,2], index: 3, kind: output, shape index: {}]  }
   0x1   :  { %9 = vsyncpa [#allocation3], 0 }
   0x2   :  { %10 = vsyncpa [#allocation4], 0  ;;  %s19_s14 = sshll.u32 %s1928_s1, 4  ;;  %s20_s14 = int_to_ptr.vmem [resolvable:$true] %s19_s14 }
   0x3   :  { %s1662_s15 = scalar_lea.vmem %s20_s14, 16  ;;  %p1667_p1 = scmp.lt.s32.totalorder %s20_s14, %s20_s14 }
   0x4   :  { %p1663_p0 = scmp.ne.s32.totalorder %s20_s14, %s1662_s15  ;;  %p1668_p2 = scmp.lt.s32.totalorder %s1662_s15, %s1662_s15 }
   0x6   :  { %p1669_p3 = por %p1668_p2, %p1667_p1 }
   0x8   :  { %p1670_p4 = pnand %p1669_p3, %p1663_p0 }
   0xa   :  { %1673 = shalt.err (!%p1670_p4)
}
   0xb   :  { %s1720_s16 = smov [#allocation2]   ;;  %s1721_s17 = smov [#allocation6]  }
   0xc   :  { %22 = dma.vmem_to_smem %s20_s14, 16, %s1720_s16, [#allocation5]  }
   0xd   :  { %s28_s18 = sshll.u32 %s1721_s17, 4  ;;  %s29_s18 = int_to_ptr.vmem [resolvable:$true] %s28_s18 }
   0xe   :  { %s1682_s19 = scalar_lea.vmem %s29_s18, 2560  ;;  %p1687_p6 = scmp.lt.s32.totalorder %s29_s18, %s29_s18 }
   0xf   :  { %p1683_p5 = scmp.ne.s32.totalorder %s29_s18, %s1682_s19  ;;  %p1688_p7 = scmp.lt.s32.totalorder %s1682_s19, %s1682_s19 }
  0x11   :  { %p1689_p8 = por %p1688_p7, %p1687_p6 }
  0x13   :  { %p1690_p9 = pnand %p1689_p8, %p1683_p5 }
  0x15   :  { %1693 = shalt.err (!%p1690_p9)
}
  0x16   :  { %s1722_s1 = smov 128   ;;  %s1723_s20 = smov 8  }
  0x17   :  { %34 = dma.hbm_to_vmem [thread:$0]  %s1929_s2, 2560, %s29_s18, [#allocation3], %s1722_s1, %s1722_s1, %s1723_s20  }
  0x18   :  { %1714 = dma.done.wait [#allocation5], 16  }
  0x19   :  { %1715 = vsyncadd [#allocation5], 4294967280 }
  0x1a   :  { %1716 = dma.done.wait [#allocation3], 2560  }
  0x1b   :  { %1717 = vsyncadd [#allocation3], 4294964736 }
  0x1c   :  { %41 = sfence }
  0x1d   :  { %v42_v0 = vld [vmem:[#allocation6] sm:$0x3]  ;;  %vm68_vm0 = vcmask 1041408   ;;  %vm55_vm1 = vcmask 15360   ;;  %v48_v2 = vld [vmem:[%s1927_s0 + $0x8] sm:$0xff]  ;;  %v1764_v3 = vld [vmem:[#allocation6 + $0x12] sm:$0xff] }
  0x1e   :  { %v47_v1 = vld [vmem:[%s1927_s0] sm:$0xff]  ;;  %1465 = vmatprep.subr.msk.mxu1 %vm68_vm0, %v42_v0  ;;  %v49_v4 = vld [vmem:[%s1927_s0 + $0x10] sm:$0xff]  ;;  %v1724_v5 = vmov 0.0   ;;  %v50_v7 = vld [vmem:[%s1927_s0 + $0x18] sm:$0xff]  ;;  %vm1725_vm2 = vmmov 0   ;;  %s1726_s0 = smov 56  }
  0x1f   :  { %1467 = vmatprep.mubr.msk.f32.mxu1 %vm55_vm1, %v47_v1  ;;  %1466 = vmatpush3.msk.msra.mxu1 %vm68_vm0, %v42_v0  ;;  %v1772_v6 = vld [vmem:[#allocation6 + $0xa] sm:$0xff]  ;;  %v1780_v8 = vld [vmem:[#allocation6 + $0x2] sm:$0xff]  ;;  %v1375_v9 = vld [vmem:[#allocation6 + $0x1a] ss:$0 sm:$0xff]  ;;  %s1727_s30 = smov 24   ;;  %s1728_s4 = smov 80  }
  0x20   :  { %1482 = vmatprep.subr.mxu0 %v1724_v5  ;;  %1468 = vmatmul.mubr.msk.f32.vlgmr.msra.gmra.mxu1 %vm55_vm1, %v48_v2  ;;  %vm157_vm3 = vcmask 195584   ;;  %s1401_s5 = sld [smem:[#allocation2 + $0x3]]  ;;  %vm1003_vm4 = vcmask 1040384   ;;  %s1729_s9 = smov 12   ;;  %vm1021_vm5 = vcmask 97280   ;;  %vm1275_vm6 = vcmask 392192  }
  0x21   :  { %1473 = vmatprep.subr.mxu1 %v1724_v5  ;;  %1470 = vmatprep.mubr.msk.f32.mxu1 %vm55_vm1, %v49_v4  ;;  %s1399_s6 = sld [smem:[#allocation2 + $0x2]]  ;;  %s1730_s14 = smov [#allocation7]   ;;  %vm1349_vm7 = vcmask 9216  }
  0x22   :  { %1474 = vmatpush3.msra.mxu1 %v1764_v3  ;;  %1483 = vmatpush3.msra.mxu0 %v1764_v3  ;;  %s1397_s10 = sld [smem:[#allocation2 + $0x1]]  ;;  %s1357_s15 = sshll.u32 %s1730_s14, 4  ;;  %s1358_s15 = int_to_ptr.vmem [resolvable:$true] %s1357_s15 }
  0x23   :  { %1475 = vmatprep.subr.mxu1 %v1724_v5  ;;  %1484 = vmatprep.subr.mxu0 %v1724_v5  ;;  %s992_s11 = sld [smem:[#allocation2]]  ;;  %s1694_s16 = scalar_lea.vmem %s1358_s15, 32 }
  0x24   :  { %1476 = vmatpush3.msra.mxu1 %v1772_v6  ;;  %1485 = vmatpush3.msra.mxu0 %v1772_v6  ;;  %p1695_p10 = scmp.ne.s32.totalorder %s1358_s15, %s1694_s16  ;;  %p1699_p11 = scmp.lt.s32.totalorder %s1358_s15, %s1358_s15 }
  0x25   :  { %1471 = vmatmul.mubr.msk.f32.gmra.mxu1 %vm55_vm1, %v50_v7  ;;  %1477 = vmatprep.subr.mxu1 %v1724_v5  ;;  %p1700_p12 = scmp.lt.s32.totalorder %s1694_s16, %s1694_s16 }
  0x26   :  { %1478 = vmatpush3.msra.mxu1 %v1780_v8  ;;  %1479 = vmatprep.mubr.msk.f32.mxu1 %vm1725_vm2, %v1724_v5  ;;  %s1373_s7 = scalar_lea.vmem [#allocation6], %s1401_s5 }
  0x27   :  { %1488 = vmatprep.mubr.msk.f32.mxu0 %vm1725_vm2, %v1724_v5  ;;  %1486 = vmatprep.subr.mxu0 %v1724_v5  ;;  %s1371_s8 = scalar_lea.vmem [#allocation6], %s1399_s6  ;;  %p1701_p13 = por %p1700_p12, %p1699_p11 }
  0x28   :  { %1491 = vmatprep.subr.mxu1 %v1724_v5  ;;  %1487 = vmatpush3.msra.mxu0 %v1780_v8  ;;  %s1369_s12 = scalar_lea.vmem [#allocation6], %s1397_s10 }
  0x29   :  { %1480 = vmatmul.mubr.f32.vlgmr.msra.gmra.mxu1 %v1724_v5  ;;  %1500 = vmatprep.subr.mxu0 %v1724_v5  ;;  %s1367_s13 = scalar_lea.vmem [#allocation6], %s992_s11  ;;  %p1702_p0 = pnand %p1701_p13, %p1695_p10 }
  0x2a   :  { %1492 = vmatpush3.msra.mxu1 %v1764_v3  ;;  %1497 = vmatprep.mubr.msk.f32.mxu1 %vm1725_vm2, %v1724_v5 }
  0x2b   :  { %1493 = vmatprep.subr.mxu1 %v1724_v5 }
  0x2c   :  { %1494 = vmatpush3.msra.mxu1 %v1772_v6 }
  0x2d   :  { %1495 = vmatprep.subr.mxu1 %v1724_v5 }
  0x2e   :  { %1496 = vmatpush3.msra.mxu1 %v1780_v8 }
  0x2f   :  { %1509 = vmatprep.subr.mxu1 %v1724_v5 }
  0xe0   :  { %v1469_v10 = vpop.f32.mrf.mxu1 }
  0xe1   :  { %v1806_v11 = vadd.f32 %v1469_v10, %v1375_v9 }
  0xe2   :  { %v138_v12 = vpop.f32.mrf.mxu1 }
  0xe3   :  { %v139_v16 = vadd.f32 %v1375_v9, %v138_v12 }
  0xe5   :  { %v1472_v13 = vpop.f32.mrf.mxu1 }
  0xe6   :  { %v1808_v14 = vadd.f32 %v1472_v13, %v1375_v9 }
  0xe7   :  { %v148_v15 = vpop.f32.mrf.mxu1 }
  0xe8   :  { %v1810_v17 = vadd.f32 %v1375_v9, %v148_v15 }
  0xe9   :  { %v227_v18 = vpop.f32.mrf.mxu1 }
  0xea   :  { %v231_v19 = vadd.f32 %v227_v18, %v139_v16 }
  0xeb   :  { %v1481_v20 = vpop.f32.mrf.mxu1 }
  0xec   :  { %1598 = vtanh.f32 %v231_v19  ;;  %v1381_v22 = vmul.f32 -1.442695, %v231_v19 }
  0xee   :  { %1600 = vpow2.f32 %v1381_v22 }
  0xf9   :  { %v1599_v21 = vpop.eup %1598 }
  0xfa   :  { %241 = vrot.lane.b32.xlu0 %v1599_v21, %s1726_s0 }
  0xfb   :  { %v1601_v23 = vpop.eup %1600 }
  0xfc   :  { %v235_v24 = vadd.f32 1.0, %v1601_v23 }
  0xfe   :  { %1602 = vrcp.f32 %v235_v24 }
 0x10b   :  { %v1603_v25 = vpop.eup %1602 }
 0x10c   :  { %v239_v28 = vmul.f32 0.0, %v1603_v25 }
 0x16c   :  { %v242_v26 = vpop.permute.xlu0 %241 }
 0x16d   :  { %v244_v27 = vmul.f32 %v1603_v25, %v242_v26 }
 0x16f   :  { %246 = vrot.lane.b32.xlu0 %v244_v27, %s1727_s30 }
 0x1e1   :  { %v247_v29 = vpop.permute.xlu0 %246 }
 0x1e2   :  { %v249_v30 = vadd.f32 %v247_v29, %v239_v28 }
 0x1e4   :  { %1604 = vtanh.f32 %v249_v30  ;;  %v343_v46 = vrot.slane %v249_v30, 4 }
 0x1f1   :  { %v1605_v31 = vpop.eup %1604 }
 0x1f2   :  { %252 = vrot.lane.b32.xlu1 %v1605_v31, %s1727_s30 }
 0x264   :  { %v253_v32 = vpop.permute.xlu1 %252 }
 0x265   :  { %v255_v33 = vmul.f32 %v1603_v25, %v253_v32 }
 0x267   :  { %257 = vrot.lane.b32.xlu1 %v255_v33, %s1728_s4 }
 0x2d9   :  { %v258_v34 = vpop.permute.xlu1 %257 }
 0x2da   :  { %1489 = vmatmul.mubr.msk.f32.vlgmr.msra.gmra.mxu0 %vm157_vm3, %v258_v34 }
 0x2db   :  { %1501 = vmatpush3.msra.mxu0 %v1764_v3  ;;  %1506 = vmatprep.mubr.msk.f32.mxu0 %vm1725_vm2, %v1724_v5 }
 0x2dc   :  { %1502 = vmatprep.subr.mxu0 %v1724_v5 }
 0x2dd   :  { %1503 = vmatpush3.msra.mxu0 %v1772_v6 }
 0x2de   :  { %1504 = vmatprep.subr.mxu0 %v1724_v5 }
 0x2df   :  { %1505 = vmatpush3.msra.mxu0 %v1780_v8 }
 0x2e0   :  { %1518 = vmatprep.subr.mxu0 %v1724_v5 }
 0x39a   :  { %v327_v35 = vpop.f32.mrf.mxu0 }
 0x39b   :  { %v332_v36 = vrot.slane %v327_v35, 4 }
 0x39c   :  { %v1490_v37 = vpop.f32.mrf.mxu0 }
 0x39d   :  { %v334_v38 = vadd.f32 %v332_v36, %v139_v16 }
 0x39f   :  { %1606 = vtanh.f32 %v334_v38  ;;  %v1383_v40 = vmul.f32 -1.442695, %v334_v38 }
 0x3a1   :  { %1608 = vpow2.f32 %v1383_v40 }
 0x3ac   :  { %v1607_v39 = vpop.eup %1606 }
 0x3ad   :  { %347 = vrot.lane.b32.xlu0 %v1607_v39, %s1726_s0 }
 0x3ae   :  { %v1609_v41 = vpop.eup %1608 }
 0x3af   :  { %v338_v42 = vadd.f32 1.0, %v1609_v41 }
 0x3b1   :  { %1610 = vrcp.f32 %v338_v42 }
 0x3be   :  { %v1611_v43 = vpop.eup %1610 }
 0x3bf   :  { %v345_v47 = vmul.f32 %v1611_v43, %v343_v46 }
 0x41f   :  { %v348_v44 = vpop.permute.xlu0 %347 }
 0x420   :  { %v350_v45 = vmul.f32 %v1611_v43, %v348_v44 }
 0x422   :  { %352 = vrot.lane.b32.xlu1 %v350_v45, %s1727_s30 }
 0x494   :  { %v353_v48 = vpop.permute.xlu1 %352 }
 0x495   :  { %v355_v49 = vadd.f32 %v353_v48, %v345_v47 }
 0x497   :  { %1612 = vtanh.f32 %v355_v49  ;;  %v447_v1 = vrot.slane %v355_v49, 4 }
 0x4a4   :  { %v1613_v50 = vpop.eup %1612 }
 0x4a5   :  { %358 = vrot.lane.b32.xlu0 %v1613_v50, %s1727_s30 }
 0x517   :  { %v359_v51 = vpop.permute.xlu0 %358 }
 0x518   :  { %v361_v52 = vmul.f32 %v1611_v43, %v359_v51 }
 0x51a   :  { %v363_v53 = vrot.slane %v361_v52, 4 }
 0x51c   :  { %364 = vrot.lane.b32.xlu1 %v363_v53, %s1728_s4 }
 0x58e   :  { %v365_v54 = vpop.permute.xlu1 %364 }
 0x58f   :  { %1498 = vmatmul.mubr.msk.f32.vlgmr.msra.gmra.mxu1 %vm157_vm3, %v365_v54 }
 0x590   :  { %1510 = vmatpush3.msra.mxu1 %v1764_v3  ;;  %1515 = vmatprep.mubr.msk.f32.mxu1 %vm1725_vm2, %v1724_v5 }
 0x591   :  { %1511 = vmatprep.subr.mxu1 %v1724_v5 }
 0x592   :  { %1512 = vmatpush3.msra.mxu1 %v1772_v6 }
 0x593   :  { %1513 = vmatprep.subr.mxu1 %v1724_v5 }
 0x594   :  { %1514 = vmatpush3.msra.mxu1 %v1780_v8 }
 0x595   :  { %1527 = vmatprep.subr.mxu1 %v1724_v5 }
 0x64f   :  { %v434_v55 = vpop.f32.mrf.mxu1 }
 0x650   :  { %v438_v56 = vadd.f32 %v434_v55, %v1806_v11 }
 0x651   :  { %v1499_v57 = vpop.f32.mrf.mxu1 }
 0x652   :  { %1614 = vtanh.f32 %v438_v56  ;;  %v1385_v59 = vmul.f32 -1.442695, %v438_v56 }
 0x654   :  { %1616 = vpow2.f32 %v1385_v59 }
 0x65f   :  { %v1615_v58 = vpop.eup %1614 }
 0x660   :  { %451 = vrot.lane.b32.xlu0 %v1615_v58, %s1726_s0 }
 0x661   :  { %v1617_v60 = vpop.eup %1616 }
 0x662   :  { %v442_v61 = vadd.f32 1.0, %v1617_v60 }
 0x664   :  { %1618 = vrcp.f32 %v442_v61 }
 0x671   :  { %v1619_v62 = vpop.eup %1618 }
 0x672   :  { %v449_v2 = vmul.f32 %v1619_v62, %v447_v1 }
 0x6d2   :  { %v452_v63 = vpop.permute.xlu0 %451 }
 0x6d3   :  { %v454_v0 = vmul.f32 %v1619_v62, %v452_v63 }
 0x6d5   :  { %456 = vrot.lane.b32.xlu1 %v454_v0, %s1727_s30 }
 0x747   :  { %v457_v4 = vpop.permute.xlu1 %456 }
 0x748   :  { %v459_v7 = vadd.f32 %v457_v4, %v449_v2 }
 0x74a   :  { %1620 = vtanh.f32 %v459_v7  ;;  %v553_v27 = vrot.slane %v459_v7, 4 }
 0x757   :  { %v1621_v9 = vpop.eup %1620 }
 0x758   :  { %462 = vrot.lane.b32.xlu0 %v1621_v9, %s1727_s30 }
 0x7ca   :  { %v463_v10 = vpop.permute.xlu0 %462 }
 0x7cb   :  { %v465_v12 = vmul.f32 %v1619_v62, %v463_v10 }
 0x7cd   :  { %467 = vrot.lane.b32.xlu1 %v465_v12, %s1728_s4 }
 0x83f   :  { %v468_v13 = vpop.permute.xlu1 %467 }
 0x840   :  { %1507 = vmatmul.mubr.msk.f32.vlgmr.msra.gmra.mxu0 %vm157_vm3, %v468_v13 }
 0x841   :  { %1519 = vmatpush3.msra.mxu0 %v1764_v3  ;;  %1524 = vmatprep.mubr.msk.f32.mxu0 %vm1725_vm2, %v1724_v5 }
 0x842   :  { %1520 = vmatprep.subr.mxu0 %v1724_v5 }
 0x843   :  { %1521 = vmatpush3.msra.mxu0 %v1772_v6 }
 0x844   :  { %1522 = vmatprep.subr.mxu0 %v1724_v5 }
 0x845   :  { %1523 = vmatpush3.msra.mxu0 %v1780_v8 }
 0x846   :  { %1536 = vmatprep.subr.mxu0 %v1724_v5 }
 0x900   :  { %v537_v15 = vpop.f32.mrf.mxu0 }
 0x901   :  { %v542_v16 = vrot.slane %v537_v15, 4 }
 0x902   :  { %v1508_v18 = vpop.f32.mrf.mxu0 }
 0x903   :  { %v544_v19 = vadd.f32 %v542_v16, %v1806_v11 }
 0x905   :  { %1622 = vtanh.f32 %v544_v19  ;;  %v1387_v21 = vmul.f32 -1.442695, %v544_v19 }
 0x907   :  { %1624 = vpow2.f32 %v1387_v21 }
 0x912   :  { %v1623_v20 = vpop.eup %1622 }
 0x913   :  { %557 = vrot.lane.b32.xlu0 %v1623_v20, %s1726_s0 }
 0x914   :  { %v1625_v22 = vpop.eup %1624 }
 0x915   :  { %v548_v23 = vadd.f32 1.0, %v1625_v22 }
 0x917   :  { %1626 = vrcp.f32 %v548_v23 }
 0x924   :  { %v1627_v24 = vpop.eup %1626 }
 0x925   :  { %v555_v28 = vmul.f32 %v1627_v24, %v553_v27 }
 0x985   :  { %v558_v25 = vpop.permute.xlu0 %557 }
 0x986   :  { %v560_v26 = vmul.f32 %v1627_v24, %v558_v25 }
 0x988   :  { %562 = vrot.lane.b32.xlu1 %v560_v26, %s1727_s30 }
 0x9fa   :  { %v563_v29 = vpop.permute.xlu1 %562 }
 0x9fb   :  { %v565_v30 = vadd.f32 %v563_v29, %v555_v28 }
 0x9fd   :  { %1628 = vtanh.f32 %v565_v30  ;;  %v657_v45 = vrot.slane %v565_v30, 4 }
 0xa0a   :  { %v1629_v11 = vpop.eup %1628 }
 0xa0b   :  { %568 = vrot.lane.b32.xlu0 %v1629_v11, %s1727_s30 }
 0xa7d   :  { %v569_v31 = vpop.permute.xlu0 %568 }
 0xa7e   :  { %v571_v32 = vmul.f32 %v1627_v24, %v569_v31 }
 0xa80   :  { %v573_v33 = vrot.slane %v571_v32, 4 }
 0xa82   :  { %574 = vrot.lane.b32.xlu1 %v573_v33, %s1728_s4 }
 0xaf4   :  { %v575_v34 = vpop.permute.xlu1 %574 }
 0xaf5   :  { %1516 = vmatmul.mubr.msk.f32.vlgmr.msra.gmra.mxu1 %vm157_vm3, %v575_v34 }
 0xaf6   :  { %1528 = vmatpush3.msra.mxu1 %v1764_v3  ;;  %1533 = vmatprep.mubr.msk.f32.mxu1 %vm1725_vm2, %v1724_v5 }
 0xaf7   :  { %1529 = vmatprep.subr.mxu1 %v1724_v5 }
 0xaf8   :  { %1530 = vmatpush3.msra.mxu1 %v1772_v6 }
 0xaf9   :  { %1531 = vmatprep.subr.mxu1 %v1724_v5 }
 0xafa   :  { %1532 = vmatpush3.msra.mxu1 %v1780_v8 }
 0xafb   :  { %1545 = vmatprep.subr.mxu1 %v1724_v5 }
 0xbb5   :  { %v644_v35 = vpop.f32.mrf.mxu1 }
 0xbb6   :  { %v648_v36 = vadd.f32 %v644_v35, %v1810_v17 }
 0xbb7   :  { %v1517_v37 = vpop.f32.mrf.mxu1 }
 0xbb8   :  { %1630 = vtanh.f32 %v648_v36  ;;  %v1389_v39 = vmul.f32 -1.442695, %v648_v36 }
 0xbba   :  { %1632 = vpow2.f32 %v1389_v39 }
 0xbc5   :  { %v1631_v38 = vpop.eup %1630 }
 0xbc6   :  { %661 = vrot.lane.b32.xlu0 %v1631_v38, %s1726_s0 }
 0xbc7   :  { %v1633_v40 = vpop.eup %1632 }
 0xbc8   :  { %v652_v41 = vadd.f32 1.0, %v1633_v40 }
 0xbca   :  { %1634 = vrcp.f32 %v652_v41 }
 0xbd7   :  { %v1635_v42 = vpop.eup %1634 }
 0xbd8   :  { %v659_v46 = vmul.f32 %v1635_v42, %v657_v45  ;;  %v1027_v45 = vld [vmem:[#allocation6 + $0x3b] sm:$0xff] }
 0xc38   :  { %v662_v43 = vpop.permute.xlu0 %661 }
 0xc39   :  { %v664_v44 = vmul.f32 %v1635_v42, %v662_v43 }
 0xc3b   :  { %666 = vrot.lane.b32.xlu1 %v664_v44, %s1727_s30  ;;  %v1025_v44 = vld [vmem:[#allocation6 + $0x2b] sm:$0xff] }
 0xcad   :  { %v667_v47 = vpop.permute.xlu1 %666 }
 0xcae   :  { %v669_v48 = vadd.f32 %v667_v47, %v659_v46  ;;  %v1024_v46 = vld [vmem:[#allocation6 + $0x23] sm:$0xff]  ;;  %v1026_v47 = vld [vmem:[#allocation6 + $0x33] sm:$0xff] }
 0xcb0   :  { %1636 = vtanh.f32 %v669_v48 }
 0xcbd   :  { %v1637_v49 = vpop.eup %1636 }
 0xcbe   :  { %672 = vrot.lane.b32.xlu0 %v1637_v49, %s1727_s30 }
 0xd30   :  { %v673_v50 = vpop.permute.xlu0 %672 }
 0xd31   :  { %v675_v51 = vmul.f32 %v1635_v42, %v673_v50  ;;  %v1402_v50 = vld [vmem:[%s1373_s7 + $0x95] sm:$0x1] }
 0xd33   :  { %677 = vrot.lane.b32.xlu1 %v675_v51, %s1728_s4 }
 0xda5   :  { %v678_v52 = vpop.permute.xlu1 %677 }
 0xda6   :  { %1525 = vmatmul.mubr.msk.f32.vlgmr.msra.gmra.mxu0 %vm157_vm3, %v678_v52 }
 0xda7   :  { %1537 = vmatpush3.msra.mxu0 %v1764_v3  ;;  %1542 = vmatprep.mubr.msk.f32.mxu0 %vm1725_vm2, %v1724_v5 }
 0xda8   :  { %1538 = vmatprep.subr.mxu0 %v1724_v5 }
 0xda9   :  { %1539 = vmatpush3.msra.mxu0 %v1772_v6 }
 0xdaa   :  { %1540 = vmatprep.subr.mxu0 %v1724_v5 }
 0xdab   :  { %1541 = vmatpush3.msra.mxu0 %v1780_v8  ;;  %v763_v8 = vrot.slane %v669_v48, 4  ;;  %v1023_v48 = vld [vmem:[#allocation6 + $0x1b] sm:$0xff] }
 0xdac   :  { %1554 = vmatprep.subr.mxu0 %v1724_v5 }
 0xe66   :  { %v747_v53 = vpop.f32.mrf.mxu0 }
 0xe67   :  { %v752_v54 = vrot.slane %v747_v53, 4  ;;  %v1014_v53 = vrot.slane %v1402_v50, 7 }
 0xe68   :  { %v1526_v55 = vpop.f32.mrf.mxu0 }
 0xe69   :  { %v754_v56 = vadd.f32 %v752_v54, %v1810_v17 }
 0xe6b   :  { %1638 = vtanh.f32 %v754_v56  ;;  %v1391_v57 = vmul.f32 -1.442695, %v754_v56  ;;  %v1400_v56 = vld [vmem:[%s1371_s8 + $0x95] sm:$0x1] }
 0xe6d   :  { %1640 = vpow2.f32 %v1391_v57  ;;  %v1398_v57 = vld [vmem:[%s1369_s12 + $0x95] sm:$0x1] }
 0xe78   :  { %v1639_v3 = vpop.eup %1638 }
 0xe79   :  { %767 = vrot.lane.b32.xlu0 %v1639_v3, %s1726_s0  ;;  %v1016_v3 = vsel %vm1003_vm4, %v1400_v56, %v1014_v53 }
 0xe7a   :  { %v1641_v58 = vpop.eup %1640 }
 0xe7b   :  { %v758_v59 = vadd.f32 1.0, %v1641_v58  ;;  %v1001_v58 = vrot.slane %v1398_v57, 7 }
 0xe7d   :  { %1642 = vrcp.f32 %v758_v59  ;;  %v1031_v59 = vld [vmem:[#allocation6 + $0x5b] sm:$0xff] }
 0xe8a   :  { %v1643_v6 = vpop.eup %1642 }
 0xe8b   :  { %v765_v62 = vmul.f32 %v1643_v6, %v763_v8  ;;  %v1030_v8 = vld [vmem:[#allocation6 + $0x53] sm:$0xff] }
 0xeeb   :  { %v768_v60 = vpop.permute.xlu0 %767 }
 0xeec   :  { %v770_v61 = vmul.f32 %v1643_v6, %v768_v60 }
 0xeee   :  { %772 = vrot.lane.b32.xlu1 %v770_v61, %s1727_s30 }
 0xf60   :  { %v773_v63 = vpop.permute.xlu1 %772 }
 0xf61   :  { %v775_v0 = vadd.f32 %v773_v63, %v765_v62  ;;  %v1029_v63 = vld [vmem:[#allocation6 + $0x4b] sm:$0xff] }
 0xf63   :  { %1644 = vtanh.f32 %v775_v0  ;;  %v867_v22 = vrot.slane %v775_v0, 4 }
 0xf70   :  { %v1645_v17 = vpop.eup %1644 }
 0xf71   :  { %778 = vrot.lane.b32.xlu0 %v1645_v17, %s1727_s30 }
 0xfe3   :  { %v779_v1 = vpop.permute.xlu0 %778 }
 0xfe4   :  { %v781_v2 = vmul.f32 %v1643_v6, %v779_v1  ;;  %v1396_v6 = vld [vmem:[%s1367_s13 + $0x95] sm:$0x1]  ;;  %v1269_v1 = vld [vmem:[#allocation6 + $0x8c] sm:$0xff] }
 0xfe5   :  { %v1004_v62 = vsel %vm1003_vm4, %v1396_v6, %v1001_v58 }
 0xfe6   :  { %v783_v4 = vrot.slane %v781_v2, 4  ;;  %v1268_v2 = vld [vmem:[#allocation6 + $0x84] sm:$0xff] }
 0xfe8   :  { %784 = vrot.lane.b32.xlu1 %v783_v4, %s1728_s4  ;;  %v1267_v4 = vld [vmem:[#allocation6 + $0x7c] sm:$0xff] }
0x105a   :  { %v785_v7 = vpop.permute.xlu1 %784 }
0x105b   :  { %1534 = vmatmul.mubr.msk.f32.vlgmr.msra.gmra.mxu1 %vm157_vm3, %v785_v7  ;;  %v1266_v7 = vld [vmem:[#allocation6 + $0x74] sm:$0xff] }
0x105c   :  { %1551 = vmatprep.mubr.msk.f32.mxu1 %vm1725_vm2, %v1724_v5 }
0x111b   :  { %v854_v9 = vpop.f32.mrf.mxu1 }
0x111c   :  { %v858_v10 = vadd.f32 %v854_v9, %v1808_v14  ;;  %v1265_v9 = vld [vmem:[#allocation6 + $0x6c] sm:$0xff] }
0x111d   :  { %v1535_v12 = vpop.f32.mrf.mxu1 }
0x111e   :  { %1646 = vtanh.f32 %v858_v10  ;;  %v1393_v15 = vmul.f32 -1.442695, %v858_v10  ;;  %v1264_v10 = vld [vmem:[#allocation6 + $0x64] sm:$0xff] }
0x1120   :  { %1648 = vpow2.f32 %v1393_v15 }
0x112b   :  { %v1647_v13 = vpop.eup %1646 }
0x112c   :  { %871 = vrot.lane.b32.xlu0 %v1647_v13, %s1726_s0 }
0x112d   :  { %v1649_v16 = vpop.eup %1648 }
0x112e   :  { %v862_v18 = vadd.f32 1.0, %v1649_v16 }
0x1130   :  { %1650 = vrcp.f32 %v862_v18 }
0x113d   :  { %v1651_v19 = vpop.eup %1650 }
0x113e   :  { %v869_v23 = vmul.f32 %v1651_v19, %v867_v22 }
0x119e   :  { %v872_v20 = vpop.permute.xlu0 %871 }
0x119f   :  { %v874_v21 = vmul.f32 %v1651_v19, %v872_v20 }
0x11a1   :  { %876 = vrot.lane.b32.xlu1 %v874_v21, %s1727_s30 }
0x1213   :  { %v877_v24 = vpop.permute.xlu1 %876 }
0x1214   :  { %v879_v25 = vadd.f32 %v877_v24, %v869_v23 }
0x1216   :  { %1652 = vtanh.f32 %v879_v25  ;;  %v973_v40 = vrot.slane %v879_v25, 4  ;;  %v1407_v25 = vld [vmem:[#allocation6 + $0x94] ss:$0 sm:$0xff] }
0x1223   :  { %v1653_v26 = vpop.eup %1652 }
0x1224   :  { %882 = vrot.lane.b32.xlu0 %v1653_v26, %s1727_s30 }
0x1296   :  { %v883_v27 = vpop.permute.xlu0 %882 }
0x1297   :  { %v885_v28 = vmul.f32 %v1651_v19, %v883_v27  ;;  %v1406_v19 = vld [vmem:[#allocation6 + $0x63] ss:$0 sm:$0xff] }
0x1299   :  { %887 = vrot.lane.b32.xlu1 %v885_v28, %s1728_s4 }
0x130b   :  { %v888_v29 = vpop.permute.xlu1 %887 }
0x130c   :  { %1543 = vmatmul.mubr.msk.f32.vlgmr.msra.gmra.mxu0 %vm157_vm3, %v888_v29 }
0x130d   :  { %1560 = vmatprep.mubr.msk.f32.mxu0 %vm1725_vm2, %v1724_v5  ;;  %1555 = vmatpush3.msra.mxu0 %v1025_v44 }
0x130e   :  { %1556 = vmatprep.subr.mxu0 %v1724_v5 }
0x130f   :  { %1557 = vmatpush3.msra.mxu0 %v1024_v46 }
0x1310   :  { %1558 = vmatprep.subr.mxu0 %v1724_v5 }
0x1311   :  { %1559 = vmatpush3.msra.mxu0 %v1023_v48 }
0x1312   :  { %1572 = vmatprep.subr.mxu0 %v1724_v5 }
0x13cc   :  { %v957_v30 = vpop.f32.mrf.mxu0 }
0x13cd   :  { %v962_v11 = vrot.slane %v957_v30, 4 }
0x13ce   :  { %v1544_v31 = vpop.f32.mrf.mxu0 }
0x13cf   :  { %v964_v32 = vadd.f32 %v962_v11, %v1808_v14  ;;  %v1028_v14 = vld [vmem:[#allocation6 + $0x43] sm:$0xff] }
0x13d0   :  { %1546 = vmatpush3.msra.mxu1 %v1028_v14 }
0x13d1   :  { %1654 = vtanh.f32 %v964_v32  ;;  %v1395_v34 = vmul.f32 -1.442695, %v964_v32  ;;  %1547 = vmatprep.subr.mxu1 %v1724_v5 }
0x13d2   :  { %1548 = vmatpush3.msra.mxu1 %v1027_v45 }
0x13d3   :  { %1656 = vpow2.f32 %v1395_v34  ;;  %1549 = vmatprep.subr.mxu1 %v1724_v5 }
0x13d4   :  { %1550 = vmatpush3.msra.mxu1 %v1026_v47 }
0x13d5   :  { %1563 = vmatprep.subr.mxu1 %v1724_v5 }
0x13de   :  { %v1655_v33 = vpop.eup %1654 }
0x13df   :  { %977 = vrot.lane.b32.xlu0 %v1655_v33, %s1726_s0 }
0x13e0   :  { %v1657_v35 = vpop.eup %1656 }
0x13e1   :  { %v968_v36 = vadd.f32 1.0, %v1657_v35 }
0x13e3   :  { %1658 = vrcp.f32 %v968_v36 }
0x13f0   :  { %v1659_v37 = vpop.eup %1658 }
0x13f1   :  { %v975_v41 = vmul.f32 %v1659_v37, %v973_v40 }
0x1451   :  { %v978_v38 = vpop.permute.xlu0 %977 }
0x1452   :  { %v980_v39 = vmul.f32 %v1659_v37, %v978_v38 }
0x1454   :  { %982 = vrot.lane.b32.xlu1 %v980_v39, %s1727_s30 }
0x14c6   :  { %v983_v42 = vpop.permute.xlu1 %982 }
0x14c7   :  { %v985_v43 = vadd.f32 %v983_v42, %v975_v41 }
0x14c9   :  { %1660 = vtanh.f32 %v985_v43 }
0x14d6   :  { %v1661_v49 = vpop.eup %1660 }
0x14d7   :  { %988 = vrot.lane.b32.xlu0 %v1661_v49, %s1727_s30 }
0x1549   :  { %v989_v51 = vpop.permute.xlu0 %988 }
0x154a   :  { %v991_v52 = vmul.f32 %v1659_v37, %v989_v51 }
0x154c   :  { %v1034_v54 = vrot.slane %v991_v52, 6  ;;  %v1109_v55 = vrot.slane %v991_v52, 4 }
0x154e   :  { %1110 = vrot.lane.b32.xlu0 %v1109_v55, %s1728_s4  ;;  %1035 = vrot.lane.b32.xlu1 %v1034_v54, %s1728_s4 }
0x1552   :  { %1018 = vrot.lane.b32.xlu1 %v1016_v3, %s1729_s9 }
0x15c0   :  { %v1111_v60 = vpop.permute.xlu0 %1110  ;;  %v1036_v61 = vpop.permute.xlu1 %1035 }
0x15c1   :  { %1552 = vmatmul.mubr.msk.f32.vlgmr.msra.gmra.mxu1 %vm157_vm3, %v1036_v61  ;;  %1561 = vmatmul.mubr.msk.f32.vlgmr.msra.gmra.mxu0 %vm157_vm3, %v1111_v60 }
0x15c2   :  { %1564 = vmatpush3.msra.mxu1 %v1031_v59  ;;  %1569 = vmatprep.mubr.msk.f32.mxu1 %vm1725_vm2, %v1724_v5 }
0x15c3   :  { %1565 = vmatprep.subr.mxu1 %v1724_v5  ;;  %1584 = vmatprep.mubr.msk.f32.mxu0 %vm1725_vm2, %v1724_v5 }
0x15c4   :  { %1566 = vmatpush3.msra.mxu1 %v1030_v8  ;;  %v1019_v0 = vpop.permute.xlu1 %1018  ;;  %1573 = vmatpush3.msra.mxu0 %v1269_v1 }
0x15c5   :  { %1567 = vmatprep.subr.mxu1 %v1724_v5  ;;  %v1022_v17 = vsel %vm1021_vm5, %v1004_v62, %v1019_v0  ;;  %1574 = vmatprep.subr.mxu0 %v1724_v5 }
0x15c6   :  { %1568 = vmatpush3.msra.mxu1 %v1029_v63  ;;  %1575 = vmatpush3.msra.mxu0 %v1268_v2 }
0x15c7   :  { %1570 = vmatmul.mubr.msk.f32.vlgmr.msra.gmra.mxu1 %vm157_vm3, %v1022_v17  ;;  %1576 = vmatprep.subr.mxu0 %v1724_v5 }
0x15c8   :  { %1577 = vmatpush3.msra.mxu0 %v1267_v4 }
0x15c9   :  { %1578 = vmatprep.subr.mxu0 %v1724_v5 }
0x15ca   :  { %1579 = vmatpush3.msra.mxu0 %v1266_v7 }
0x15cb   :  { %1580 = vmatprep.subr.mxu0 %v1724_v5 }
0x15cc   :  { %1581 = vmatpush3.msra.mxu0 %v1265_v9 }
0x15cd   :  { %1582 = vmatprep.subr.mxu0 %v1724_v5 }
0x15ce   :  { %1583 = vmatpush3.msra.mxu0 %v1264_v10 }
0x1681   :  { %v1105_v12 = vpop.f32.mrf.mxu1  ;;  %v1180_v13 = vpop.f32.mrf.mxu0 }
0x1682   :  { %v1181_v18 = vadd.f32 %v1180_v13, %v1105_v12 }
0x1683   :  { %v1553_v15 = vpop.f32.mrf.mxu1  ;;  %v1562_v16 = vpop.f32.mrf.mxu0 }
0x1687   :  { %v1253_v20 = vpop.f32.mrf.mxu1 }
0x1688   :  { %v1257_v21 = vadd.f32 %v1253_v20, %v1181_v18 }
0x1689   :  { %v1571_v22 = vpop.f32.mrf.mxu1 }
0x168a   :  { %v1262_v23 = vadd.f32 %v1406_v19, %v1257_v21 }
0x168c   :  { %v1263_v24 = vmax.f32 %v1262_v23, 0.0 }
0x168e   :  { %1585 = vmatmul.mubr.msk.f32.vlgmr.msra.gmra.mxu0 %vm1275_vm6, %v1263_v24 }
0x174e   :  { %v1345_v26 = vpop.f32.mrf.mxu0 }
0x174f   :  { %v1346_v5 = vadd.f32 %v1407_v25, %v1345_v26 }
0x1750   :  { %v1586_v27 = vpop.f32.mrf.mxu0 }
0x1751   :  { %1350 = vst.msk [vmem:[#allocation7] sm:$0x3] %vm1349_vm7, %v1346_v5 }
0x1752   :  { %1705 = shalt.err (!%p1702_p0)
}
0x1753   :  { %1360 = dma.vmem_to_hbm [thread:$0]  %s1358_s15, 32, %s1930_s3, [#allocation4]  }
0x1754   :  { %1718 = dma.done.wait [#allocation4], 32  }
0x1755   :  { %1719 = vsyncadd [#allocation4], 4294967264 }
0x1756   :  { %1364 = vsyncpa [#allocation3], 1 }
0x1757   :  { %1365 = vsyncpa [#allocation4], 1 }
0x1758   :  { %1366 = vsyncpa [#allocation5], 1 }

</bundles_post_ra>
